<compile_context>
chip_gen: v5e
topology: v5e:2x2
jax: 0.10.0
libtpu: 0.0.40
codegen_flags: <defaults>
</compile_context>

<pallas_src>
import functools

import jax
import jax.numpy as jnp
from jax.experimental import pallas as pl
from jax.experimental.pallas import tpu as pltpu


def _round_up(x, m):
    return ((x + m - 1) // m) * m


def _fused_gemm_bn_mish_kernel(p_ref, w_ref, b_ref, o_ref):
    # p_ref: (TM, Kp)   bf16 im2col patches tile
    # w_ref: (Kp, TN)   bf16 conv weights with the folded BN scale already baked in
    # b_ref: (1,  TN)   f32 folded BN bias  = beta - mean * gamma / sqrt(var + eps)
    # o_ref: (TM, TN)   lane-dense output tile (unmasked full-lane stores)
    #
    # Single MXU matmul over the full contraction; f32 *vreg* accumulator (no VMEM
    # scratch, no per-tap round trips).
    acc = jnp.dot(p_ref[...], w_ref[...], preferred_element_type=jnp.float32)

    # Folded BatchNorm (scale already folded into weights) -> just the bias add.
    y = acc + b_ref[...]

    # Mish(y) = y * tanh(softplus(y)) = y * num/(num+2) = y - 2*y/(num+2),  num = exp(y)*(exp(y)+2).
    # Branchless: when exp overflows, num+2 = inf -> reciprocal -> 0 -> mish = y (exact to f32).
    t = jnp.exp(y)
    num = t * (t + 2.0)
    out = y - 2.0 * y * pl.reciprocal(num + 2.0, approx=True)

    o_ref[...] = out.astype(o_ref.dtype)


def _pick_tiling(m, k_p, c_out, out_itemsize):
    """Return (tm, tn, c_out_p).  Prefers fully-resident weights (tn == c_out_p)."""
    budget = 40 * 1024 * 1024  # conservative: fits v7x's 64 MiB physical VMEM w/ headroom

    def vmem_est(tm, tn):
        return (2 * tm * k_p * 2          # bf16 patches tile, double-buffered
                + 2 * k_p * tn * 2        # bf16 weight tile,  double-buffered
                + 2 * 8 * tn * 4          # f32 bias tile (sublane-padded), double-buffered
                + 2 * tm * tn * out_itemsize)  # output tile, double-buffered

    tm_full = 512 if m >= 512 else _round_up(max(m, 8), 8)
    c_out_128 = _round_up(c_out, 128)

    # Preferred: whole weight slab resident -> patches streamed from HBM exactly once.
    for tm in (tm_full, 256, 128):
        if tm > tm_full:
            continue
        if vmem_est(tm, c_out_128) <= budget:
            return tm, c_out_128, c_out_128

    # Fallback: tile Cout; M stays the slow axis so patches are still fetched only once
    # per M tile, only the (much smaller) weights get re-streamed.
    for tn in (512, 256, 128):
        for tm in (tm_full, 256, 128):
            if tm > tm_full:
                continue
            if vmem_est(tm, tn) <= budget:
                return tm, tn, _round_up(c_out, tn)

    return min(tm_full, 128), 128, c_out_128


@functools.partial(jax.jit, static_argnames=("stride", "eps"))
def basic_conv_forward(x_nchw, weight_oihw, bn_gamma, bn_beta, bn_mean, bn_var,
                       *, stride=1, eps=1e-5):
    """Forward of BasicConv.  x_nchw: (N, Cin, H, W) like PyTorch; returns NCHW."""
    n, c_in, h, w = x_nchw.shape
    c_out, c_in_w, kh, kw = weight_oihw.shape
    assert c_in_w == c_in
    assert kh == kw, "BasicConv uses square kernels (padding = kernel_size // 2)"
    pad = kh // 2

    h_out = (h + 2 * pad - kh) // stride + 1
    w_out = (w + 2 * pad - kw) // stride + 1

    # ---------------- layout plumbing (plain JAX, no compute) ----------------
    x_nhwc = jnp.transpose(x_nchw, (0, 2, 3, 1)).astype(jnp.bfloat16)
    x_pad = jnp.pad(x_nhwc, ((0, 0), (pad, pad), (pad, pad), (0, 0)))

    # im2col: K axis ordered (kh, kw, c_in) to match the weight flattening below.
    # TODO(synk): replace with an in-kernel halo-DMA im2col for mem-bound 3x3 layers.
    taps = []
    for ih in range(kh):
        for iw in range(kw):
            taps.append(x_pad[:, ih:ih + stride * (h_out - 1) + 1:stride,
                               iw:iw + stride * (w_out - 1) + 1:stride, :])
    k_dim = kh * kw * c_in
    m = n * h_out * w_out
    patches = jnp.concatenate(taps, axis=-1).reshape(m, k_dim)          # (M, K) bf16

    # Folded BN (eval mode), in f32.
    scale = (bn_gamma / jnp.sqrt(bn_var + eps)).astype(jnp.float32)
    bias = (bn_beta - bn_mean * scale).astype(jnp.float32)

    # Weights (Cout,Cin,KH,KW) -> (KH,KW,Cin,Cout) -> (K, Cout); fold BN scale in f32,
    # then cast to the MXU-native bf16.
    w_flat = jnp.transpose(weight_oihw, (2, 3, 1, 0)).reshape(k_dim, c_out)
    w_flat = (w_flat.astype(jnp.float32) * scale[None, :])

    # ---------------- tile / lane padding ----------------
    out_dtype = x_nchw.dtype
    k_p = _round_up(k_dim, 128)
    tm, tn, c_out_p = _pick_tiling(m, k_p, c_out, jnp.dtype(out_dtype).itemsize)
    m_p = _round_up(m, tm)

    patches = jnp.pad(patches, ((0, m_p - m), (0, k_p - k_dim)))
    w_flat = jnp.pad(w_flat, ((0, k_p - k_dim), (0, c_out_p - c_out))).astype(jnp.bfloat16)
    bias_p = jnp.pad(bias, (0, c_out_p - c_out)).reshape(1, c_out_p)

    # ---------------- grid ----------------
    if tn == c_out_p:
        # Weights/bias resident in VMEM (constant index_map -> fetched once);
        # patches are read from HBM exactly once.  M tiles shard across v7x's 2 TCs.
        grid = (m_p // tm,)
        in_specs = [
            pl.BlockSpec((tm, k_p), lambda i: (i, 0)),   # patches
            pl.BlockSpec((k_p, tn), lambda i: (0, 0)),   # weights (resident)
            pl.BlockSpec((1, tn), lambda i: (0, 0)),     # BN bias (resident)
        ]
        out_specs = pl.BlockSpec((tm, tn), lambda i: (i, 0))
        dims = ("parallel",)
    else:
        # M is the slow axis -> patches still fetched once per M tile; only weights
        # (much smaller) are re-streamed per Cout tile.
        grid = (m_p // tm, c_out_p // tn)
        in_specs = [
            pl.BlockSpec((tm, k_p), lambda i, j: (i, 0)),
            pl.BlockSpec((k_p, tn), lambda i, j: (0, j)),
            pl.BlockSpec((1, tn), lambda i, j: (0, j)),
        ]
        out_specs = pl.BlockSpec((tm, tn), lambda i, j: (i, j))
        dims = ("parallel", "parallel")

    vmem_est = (2 * tm * k_p * 2 + 2 * k_p * tn * 2 + 2 * 8 * tn * 4
                + 2 * tm * tn * jnp.dtype(out_dtype).itemsize)
    vmem_limit = int(min(max(vmem_est + (4 << 20), 32 << 20), 56 << 20))

    out2d = pl.pallas_call(
        _fused_gemm_bn_mish_kernel,
        out_shape=jax.ShapeDtypeStruct((m_p, c_out_p), out_dtype),
        grid_spec=pltpu.PrefetchScalarGridSpec(
            num_scalar_prefetch=0,
            grid=grid,
            in_specs=in_specs,
            out_specs=out_specs,
        ),
        compiler_params=pltpu.CompilerParams(
            dimension_semantics=dims,
            vmem_limit_bytes=vmem_limit,
        ),
    )(patches, w_flat, bias_p)

    # Strip padding, back to NCHW like PyTorch.
    out_nhwc = out2d[:m, :c_out].reshape(n, h_out, w_out, c_out)
    return jnp.transpose(out_nhwc, (0, 3, 1, 2))


def _reference(x_nchw, weight_oihw, bn_gamma, bn_beta, bn_mean, bn_var,
               *, stride=1, eps=1e-5):
    pad = weight_oihw.shape[2] // 2
    y = jax.lax.conv_general_dilated(
        x_nchw, weight_oihw, window_strides=(stride, stride),
        padding=((pad, pad), (pad, pad)),
        dimension_numbers=("NCHW", "OIHW", "NCHW"))
    scale = bn_gamma / jnp.sqrt(bn_var + eps)
    bias = bn_beta - bn_mean * scale
    y = y * scale[None, :, None, None] + bias[None, :, None, None]
    return y * jnp.tanh(jnp.logaddexp(y, 0.0))


if __name__ == "__main__":
    key = jax.random.PRNGKey(0)
    k_x, k_w, k_g, k_b, k_m, k_v = jax.random.split(key, 6)

    # Small shapes consistent with BasicConv(in_channels=4, out_channels=8, kernel_size=3)
    N, C_IN, H, W = 2, 4, 16, 16
    C_OUT, K, STRIDE = 8, 3, 1

    x = jax.random.normal(k_x, (N, C_IN, H, W), dtype=jnp.float32)
    weight = jax.random.normal(k_w, (C_OUT, C_IN, K, K), dtype=jnp.float32) * 0.1
    # Deterministic synthetic BatchNorm (eval-mode) statistics
    gamma = 1.0 + 0.1 * jax.random.normal(k_g, (C_OUT,), dtype=jnp.float32)
    beta = 0.1 * jax.random.normal(k_b, (C_OUT,), dtype=jnp.float32)
    running_mean = 0.1 * jax.random.normal(k_m, (C_OUT,), dtype=jnp.float32)
    running_var = jnp.abs(1.0 + 0.1 * jax.random.normal(k_v, (C_OUT,), dtype=jnp.float32))

    out = basic_conv_forward(x, weight, gamma, beta, running_mean, running_var,
                             stride=STRIDE)
    out = jax.block_until_ready(out)

    ref = _reference(x, weight, gamma, beta, running_mean, running_var, stride=STRIDE)
    assert out.shape == (N, C_OUT, H, W)
    # Tolerance reflects bf16 matmul operands + approximate reciprocal in Mish;
    # accumulation itself is exact f32 in the MXU.
    assert jnp.allclose(out, ref, atol=3e-2, rtol=3e-2), "mismatch vs JAX reference"

    print("KERNEL_OK")
</pallas_src>

<mosaic_0001>
module attributes {stable_mosaic.version = 11 : i64} {
  func.func @_fused_gemm_bn_mish_kernel(%arg0: i32, %arg1: memref<512x128xbf16, #tpu.memory_space<vmem>>, %arg2: memref<128x128xbf16, #tpu.memory_space<vmem>>, %arg3: memref<1x128xf32, #tpu.memory_space<vmem>>, %arg4: memref<512x128xf32, #tpu.memory_space<vmem>>) attributes {dimension_semantics = [#tpu.dimension_semantics<parallel>], iteration_bounds = array<i64: 1>, scalar_prefetch = 0 : i64, scratch_operands = 0 : i64, tpu.core_type = #tpu.core_type<tc>, window_params = [{transform_indices = @transform_0, window_bounds = array<i64: 512, 128>}, {pipeline_mode = #tpu.pipeline_mode<synchronous>, transform_indices = @transform_1, window_bounds = array<i64: 128, 128>}, {pipeline_mode = #tpu.pipeline_mode<synchronous>, transform_indices = @transform_2, window_bounds = array<i64: 1, 128>}, {transform_indices = @transform_3, window_bounds = array<i64: 512, 128>}]} {
    %c0 = arith.constant 0 : index
    %c0_0 = arith.constant 0 : index
    %0 = vector.load %arg1[%c0, %c0_0] : memref<512x128xbf16, #tpu.memory_space<vmem>>, vector<512x128xbf16>
    %c0_1 = arith.constant 0 : index
    %c0_2 = arith.constant 0 : index
    %1 = vector.load %arg2[%c0_1, %c0_2] : memref<128x128xbf16, #tpu.memory_space<vmem>>, vector<128x128xbf16>
    %cst = arith.constant dense<0.000000e+00> : vector<512x128xf32>
    %2 = tpu.matmul %0, %1, %cst {dimension_numbers = #tpu.dot_dimension_numbers<[1], [0], [0], [1], [0, 0, 1, 1], [], []>} : vector<512x128xbf16>, vector<128x128xbf16>, vector<512x128xf32> -> vector<512x128xf32>
    %c0_3 = arith.constant 0 : index
    %c0_4 = arith.constant 0 : index
    %3 = vector.load %arg3[%c0_3, %c0_4] : memref<1x128xf32, #tpu.memory_space<vmem>>, vector<1x128xf32>
    %4 = vector.broadcast %3 : vector<1x128xf32> to vector<512x128xf32>
    %5 = arith.addf %2, %4 : vector<512x128xf32>
    %6 = math.exp %5 : vector<512x128xf32>
    %cst_5 = arith.constant 2.000000e+00 : f32
    %7 = vector.broadcast %cst_5 : f32 to vector<512x128xf32>
    %8 = arith.addf %6, %7 : vector<512x128xf32>
    %9 = arith.mulf %6, %8 : vector<512x128xf32>
    %cst_6 = arith.constant 2.000000e+00 : f32
    %10 = vector.broadcast %cst_6 : f32 to vector<512x128xf32>
    %11 = arith.mulf %10, %5 : vector<512x128xf32>
    %cst_7 = arith.constant 2.000000e+00 : f32
    %12 = vector.broadcast %cst_7 : f32 to vector<512x128xf32>
    %13 = arith.addf %9, %12 : vector<512x128xf32>
    %14 = tpu.reciprocal %13 {approx = true} : vector<512x128xf32> -> vector<512x128xf32>
    %15 = arith.mulf %11, %14 : vector<512x128xf32>
    %16 = arith.subf %5, %15 : vector<512x128xf32>
    %c0_8 = arith.constant 0 : index
    %c0_9 = arith.constant 0 : index
    %17 = vector.load %arg4[%c0_8, %c0_9] : memref<512x128xf32, #tpu.memory_space<vmem>>, vector<512x128xf32>
    tpu.vector_store %arg4[%c0_8, %c0_9], %16 {strides = array<i32>} : memref<512x128xf32, #tpu.memory_space<vmem>>, vector<512x128xf32>,
    return
  }
  func.func @transform_0(%arg0: i32) -> (i32, i32) {
    %c0_i32 = arith.constant 0 : i32
    %c0_i32_0 = arith.constant 0 : i32
    return %arg0, %c0_i32 : i32, i32
  }
  func.func @transform_1(%arg0: i32) -> (i32, i32) {
    %c0_i32 = arith.constant 0 : i32
    %c0_i32_0 = arith.constant 0 : i32
    %c0_i32_1 = arith.constant 0 : i32
    return %c0_i32, %c0_i32_0 : i32, i32
  }
  func.func @transform_2(%arg0: i32) -> (i32, i32) {
    %c0_i32 = arith.constant 0 : i32
    %c0_i32_0 = arith.constant 0 : i32
    %c0_i32_1 = arith.constant 0 : i32
    return %c0_i32, %c0_i32_0 : i32, i32
  }
  func.func @transform_3(%arg0: i32) -> (i32, i32) {
    %c0_i32 = arith.constant 0 : i32
    %c0_i32_0 = arith.constant 0 : i32
    return %arg0, %c0_i32 : i32, i32
  }
}

</mosaic_0001>

<bundles_post_ra>
// kernel: basic_conv_forward.1
= control target key start
LH: loop header
LB: loop body
LE: loop exit
PB: predicated region body
PF: predicated region fallthrough
CT: control target
= control target key end

     0   :  { %s2359_s1 = inlined_call_operand.vmem [shape: bf16[128,128], index: 1, kind: input, shape index: {}]   ;;  %s2360_s2 = inlined_call_operand.vmem [shape: f32[1,128], index: 2, kind: input, shape index: {}]   ;;  %s2361_s0 = inlined_call_operand.vmem [shape: bf16[512,128], index: 0, kind: input, shape index: {}]   ;;  %s2362_s3 = inlined_call_operand.vmem [shape: f32[512,128], index: 3, kind: output, shape index: {}]  }
   0x1   :  { %v1350_v0 = vld [vmem:[%s2359_s1 + $0x38] sm:$0xff]  ;;  %v1349_v1 = vld [vmem:[%s2359_s1 + $0x30] sm:$0xff]  ;;  %v1348_v2 = vld [vmem:[%s2359_s1 + $0x28] sm:$0xff] }
   0x2   :  { %338 = vmatpush.bf16.msra.mxu0 %v1350_v0  ;;  %1351 = vmatpush.bf16.msra.mxu1 %v1350_v0  ;;  %v1347_v3 = vld [vmem:[%s2359_s1 + $0x20] sm:$0xff]  ;;  %v1346_v4 = vld [vmem:[%s2359_s1 + $0x18] sm:$0xff]  ;;  %v1345_v5 = vld [vmem:[%s2359_s1 + $0x10] sm:$0xff] }
   0x3   :  { %1352 = vmatpush.bf16.msra.mxu2 %v1350_v0  ;;  %1353 = vmatpush.bf16.msra.mxu3 %v1350_v0  ;;  %v1344_v6 = vld [vmem:[%s2359_s1 + $0x8] sm:$0xff]  ;;  %v1343_v7 = vld [vmem:[%s2359_s1] sm:$0xff]  ;;  %v1313_v16 = vld [vmem:[%s2361_s0 + $0x10] sm:$0xff] }
   0x4   :  { %v1311_v8 = vld [vmem:[%s2361_s0] sm:$0xff]  ;;  %v1312_v12 = vld [vmem:[%s2361_s0 + $0x8] sm:$0xff]  ;;  %v1321_v17 = vld [vmem:[%s2361_s0 + $0x50] sm:$0xff] }
   0x5   :  { %v1319_v9 = vld [vmem:[%s2361_s0 + $0x40] sm:$0xff]  ;;  %v1320_v13 = vld [vmem:[%s2361_s0 + $0x48] sm:$0xff]  ;;  %v1329_v18 = vld [vmem:[%s2361_s0 + $0x90] sm:$0xff] }
   0x6   :  { %339 = vmatpush.bf16.msra.mxu0 %v1349_v1  ;;  %1354 = vmatpush.bf16.msra.mxu1 %v1349_v1  ;;  %v1327_v10 = vld [vmem:[%s2361_s0 + $0x80] sm:$0xff]  ;;  %v1328_v14 = vld [vmem:[%s2361_s0 + $0x88] sm:$0xff]  ;;  %v1337_v19 = vld [vmem:[%s2361_s0 + $0xd0] sm:$0xff] }
   0x7   :  { %1355 = vmatpush.bf16.msra.mxu2 %v1349_v1  ;;  %1356 = vmatpush.bf16.msra.mxu3 %v1349_v1  ;;  %v1335_v11 = vld [vmem:[%s2361_s0 + $0xc0] sm:$0xff]  ;;  %v1336_v15 = vld [vmem:[%s2361_s0 + $0xc8] sm:$0xff]  ;;  %v1314_v20 = vld [vmem:[%s2361_s0 + $0x18] sm:$0xff] }
   0x8   :  { %v1322_v21 = vld [vmem:[%s2361_s0 + $0x58] sm:$0xff]  ;;  %v1315_v24 = vld [vmem:[%s2361_s0 + $0x20] sm:$0xff]  ;;  %v1316_v28 = vld [vmem:[%s2361_s0 + $0x28] sm:$0xff] }
   0x9   :  { %v1330_v22 = vld [vmem:[%s2361_s0 + $0x98] sm:$0xff]  ;;  %v1323_v25 = vld [vmem:[%s2361_s0 + $0x60] sm:$0xff]  ;;  %v1324_v29 = vld [vmem:[%s2361_s0 + $0x68] sm:$0xff] }
   0xa   :  { %340 = vmatpush.bf16.msra.mxu0 %v1348_v2  ;;  %1357 = vmatpush.bf16.msra.mxu1 %v1348_v2  ;;  %v1338_v23 = vld [vmem:[%s2361_s0 + $0xd8] sm:$0xff]  ;;  %v1331_v26 = vld [vmem:[%s2361_s0 + $0xa0] sm:$0xff]  ;;  %v1332_v30 = vld [vmem:[%s2361_s0 + $0xa8] sm:$0xff] }
   0xb   :  { %1358 = vmatpush.bf16.msra.mxu2 %v1348_v2  ;;  %1359 = vmatpush.bf16.msra.mxu3 %v1348_v2  ;;  %v1339_v27 = vld [vmem:[%s2361_s0 + $0xe0] sm:$0xff]  ;;  %v1340_v31 = vld [vmem:[%s2361_s0 + $0xe8] sm:$0xff]  ;;  %v1317_v32 = vld [vmem:[%s2361_s0 + $0x30] sm:$0xff] }
   0xc   :  { %v1325_v33 = vld [vmem:[%s2361_s0 + $0x70] sm:$0xff]  ;;  %v1318_v36 = vld [vmem:[%s2361_s0 + $0x38] sm:$0xff]  ;;  %v1776_v40 = vld [vmem:[%s2360_s2] ss:$0 sm:$0xff] }
   0xd   :  { %v1333_v34 = vld [vmem:[%s2361_s0 + $0xb0] sm:$0xff]  ;;  %v1326_v37 = vld [vmem:[%s2361_s0 + $0x78] sm:$0xff] }
   0xe   :  { %341 = vmatpush.bf16.msra.mxu0 %v1347_v3  ;;  %1360 = vmatpush.bf16.msra.mxu1 %v1347_v3  ;;  %v1341_v35 = vld [vmem:[%s2361_s0 + $0xf0] sm:$0xff]  ;;  %v1334_v38 = vld [vmem:[%s2361_s0 + $0xb8] sm:$0xff] }
   0xf   :  { %1361 = vmatpush.bf16.msra.mxu2 %v1347_v3  ;;  %1362 = vmatpush.bf16.msra.mxu3 %v1347_v3  ;;  %v1342_v39 = vld [vmem:[%s2361_s0 + $0xf8] sm:$0xff] }
  0x12   :  { %342 = vmatpush.bf16.msra.mxu0 %v1346_v4  ;;  %1363 = vmatpush.bf16.msra.mxu1 %v1346_v4 }
  0x13   :  { %1364 = vmatpush.bf16.msra.mxu2 %v1346_v4  ;;  %1365 = vmatpush.bf16.msra.mxu3 %v1346_v4 }
  0x16   :  { %343 = vmatpush.bf16.msra.mxu0 %v1345_v5  ;;  %1366 = vmatpush.bf16.msra.mxu1 %v1345_v5 }
  0x17   :  { %1367 = vmatpush.bf16.msra.mxu2 %v1345_v5  ;;  %1368 = vmatpush.bf16.msra.mxu3 %v1345_v5 }
  0x1a   :  { %344 = vmatpush.bf16.msra.mxu0 %v1344_v6  ;;  %1369 = vmatpush.bf16.msra.mxu1 %v1344_v6 }
  0x1b   :  { %1370 = vmatpush.bf16.msra.mxu2 %v1344_v6  ;;  %1371 = vmatpush.bf16.msra.mxu3 %v1344_v6 }
  0x1e   :  { %345 = vmatpush.bf16.msra.mxu0 %v1343_v7  ;;  %1372 = vmatpush.bf16.msra.mxu1 %v1343_v7 }
  0x1f   :  { %1373 = vmatpush.bf16.msra.mxu2 %v1343_v7  ;;  %1374 = vmatpush.bf16.msra.mxu3 %v1343_v7 }
  0x21   :  { %346 = vmatmul.bf16.vlgmr.msra.gmra.mxu0 %v1311_v8  ;;  %386 = vmatmul.bf16.vlgmr.msra.gmra.mxu1 %v1319_v9 }
  0x22   :  { %426 = vmatmul.bf16.vlgmr.msra.gmra.mxu2 %v1327_v10  ;;  %466 = vmatmul.bf16.vlgmr.msra.gmra.mxu3 %v1335_v11 }
  0x31   :  { %351 = vmatmul.bf16.gmra.mxu0 %v1312_v12  ;;  %391 = vmatmul.bf16.gmra.mxu1 %v1320_v13 }
  0x32   :  { %431 = vmatmul.bf16.gmra.mxu2 %v1328_v14  ;;  %471 = vmatmul.bf16.gmra.mxu3 %v1336_v15 }
  0x41   :  { %356 = vmatmul.bf16.gmra.mxu0 %v1313_v16  ;;  %396 = vmatmul.bf16.gmra.mxu1 %v1321_v17 }
  0x42   :  { %436 = vmatmul.bf16.gmra.mxu2 %v1329_v18  ;;  %476 = vmatmul.bf16.gmra.mxu3 %v1337_v19 }
  0x51   :  { %361 = vmatmul.bf16.gmra.mxu0 %v1314_v20  ;;  %401 = vmatmul.bf16.gmra.mxu1 %v1322_v21 }
  0x52   :  { %441 = vmatmul.bf16.gmra.mxu2 %v1330_v22  ;;  %481 = vmatmul.bf16.gmra.mxu3 %v1338_v23 }
  0x61   :  { %366 = vmatmul.bf16.gmra.mxu0 %v1315_v24  ;;  %406 = vmatmul.bf16.gmra.mxu1 %v1323_v25 }
  0x62   :  { %446 = vmatmul.bf16.gmra.mxu2 %v1331_v26  ;;  %486 = vmatmul.bf16.gmra.mxu3 %v1339_v27 }
  0x71   :  { %371 = vmatmul.bf16.gmra.mxu0 %v1316_v28  ;;  %411 = vmatmul.bf16.gmra.mxu1 %v1324_v29 }
  0x72   :  { %451 = vmatmul.bf16.gmra.mxu2 %v1332_v30  ;;  %491 = vmatmul.bf16.gmra.mxu3 %v1340_v31 }
  0x81   :  { %376 = vmatmul.bf16.gmra.mxu0 %v1317_v32  ;;  %416 = vmatmul.bf16.gmra.mxu1 %v1325_v33 }
  0x82   :  { %456 = vmatmul.bf16.gmra.mxu2 %v1333_v34  ;;  %496 = vmatmul.bf16.gmra.mxu3 %v1341_v35 }
  0x91   :  { %381 = vmatmul.bf16.gmra.mxu0 %v1318_v36  ;;  %421 = vmatmul.bf16.gmra.mxu1 %v1326_v37 }
  0x92   :  { %461 = vmatmul.bf16.gmra.mxu2 %v1334_v38  ;;  %501 = vmatmul.bf16.gmra.mxu3 %v1342_v39 }
  0x9e   :  { %v347_v41 = vpop.f32.mrf.mxu0  ;;  %v387_v42 = vpop.f32.mrf.mxu1 }
  0x9f   :  { %v1779_v43 = vadd.f32 %v1776_v40, %v347_v41  ;;  %v1782_v44 = vadd.f32 %v1776_v40, %v387_v42 }
  0xa1   :  { %v507_v45 = vmul.f32 1.442695, %v1779_v43  ;;  %v539_v46 = vmul.f32 1.442695, %v1782_v44  ;;  %v763_v18 = vmul.f32 2.0, %v1779_v43  ;;  %v779_v22 = vmul.f32 2.0, %v1782_v44 }
  0xa3   :  { %1376 = vpow2.f32 %v507_v45 }
  0xa4   :  { %1378 = vpow2.f32 %v539_v46 }
  0xa5   :  { %v427_v47 = vpop.f32.mrf.mxu2  ;;  %v467_v48 = vpop.f32.mrf.mxu3 }
  0xa6   :  { %v1787_v49 = vadd.f32 %v1776_v40, %v427_v47  ;;  %v1790_v50 = vadd.f32 %v1776_v40, %v467_v48  ;;  %v349_v51 = vpop.f32.mrf.mxu0  ;;  %v389_v52 = vpop.f32.mrf.mxu1 }
  0xa7   :  { %v1793_v53 = vadd.f32 %v1776_v40, %v349_v51  ;;  %v1796_v54 = vadd.f32 %v1776_v40, %v389_v52 }
  0xa8   :  { %v571_v55 = vmul.f32 1.442695, %v1787_v49  ;;  %v603_v56 = vmul.f32 1.442695, %v1790_v50  ;;  %v795_v25 = vmul.f32 2.0, %v1787_v49  ;;  %v811_v29 = vmul.f32 2.0, %v1790_v50 }
  0xa9   :  { %v1377_v57 = vpop.eup %1376  ;;  %v509_v58 = vmul.f32 1.442695, %v1793_v53  ;;  %v541_v59 = vmul.f32 1.442695, %v1796_v54 }
  0xaa   :  { %v1379_v60 = vpop.eup %1378  ;;  %v635_v61 = vadd.f32 2.0, %v1377_v57  ;;  %1380 = vpow2.f32 %v571_v55 }
  0xab   :  { %v651_v62 = vadd.f32 2.0, %v1379_v60  ;;  %1382 = vpow2.f32 %v603_v56 }
  0xac   :  { %v699_v63 = vmul.f32 %v1377_v57, %v635_v61  ;;  %1384 = vpow2.f32 %v509_v58  ;;  %v764_v57 = vmul.f32 2.0, %v1793_v53 }
  0xad   :  { %v715_v0 = vmul.f32 %v1379_v60, %v651_v62  ;;  %1386 = vpow2.f32 %v541_v59  ;;  %v429_v1 = vpop.f32.mrf.mxu2  ;;  %v469_v2 = vpop.f32.mrf.mxu3 }
  0xae   :  { %v827_v3 = vadd.f32 2.0, %v699_v63  ;;  %v1803_v4 = vadd.f32 %v1776_v40, %v429_v1  ;;  %v1806_v5 = vadd.f32 %v1776_v40, %v469_v2  ;;  %v352_v6 = vpop.f32.mrf.mxu0  ;;  %v392_v7 = vpop.f32.mrf.mxu1 }
  0xaf   :  { %v843_v8 = vadd.f32 2.0, %v715_v0  ;;  %v1809_v9 = vadd.f32 %v1776_v40, %v352_v6  ;;  %v1812_v10 = vadd.f32 %v1776_v40, %v392_v7  ;;  %v780_v0 = vmul.f32 2.0, %v1796_v54 }
  0xb0   :  { %v1381_v11 = vpop.eup %1380  ;;  %1388 = vrcp.f32 %v827_v3  ;;  %v573_v12 = vmul.f32 1.442695, %v1803_v4  ;;  %v605_v13 = vmul.f32 1.442695, %v1806_v5  ;;  %v796_v7 = vmul.f32 2.0, %v1803_v4 }
  0xb1   :  { %v1383_v14 = vpop.eup %1382  ;;  %1390 = vrcp.f32 %v843_v8  ;;  %v667_v15 = vadd.f32 2.0, %v1381_v11  ;;  %v511_v16 = vmul.f32 1.442695, %v1809_v9  ;;  %v543_v20 = vmul.f32 1.442695, %v1812_v10 }
  0xb2   :  { %v1385_v17 = vpop.eup %1384  ;;  %v683_v19 = vadd.f32 2.0, %v1383_v14  ;;  %1392 = vpow2.f32 %v573_v12 }
  0xb3   :  { %v1387_v21 = vpop.eup %1386  ;;  %v731_v23 = vmul.f32 %v1381_v11, %v667_v15  ;;  %v636_v24 = vadd.f32 2.0, %v1385_v17  ;;  %1394 = vpow2.f32 %v605_v13 }
  0xb4   :  { %v747_v26 = vmul.f32 %v1383_v14, %v683_v19  ;;  %v652_v27 = vadd.f32 2.0, %v1387_v21  ;;  %1396 = vpow2.f32 %v511_v16 }
  0xb5   :  { %v859_v28 = vadd.f32 2.0, %v731_v23  ;;  %v700_v30 = vmul.f32 %v1385_v17, %v636_v24  ;;  %1398 = vpow2.f32 %v543_v20  ;;  %v432_v31 = vpop.f32.mrf.mxu2  ;;  %v472_v32 = vpop.f32.mrf.mxu3 }
  0xb6   :  { %v1389_v33 = vpop.eup %1388  ;;  %v875_v34 = vadd.f32 2.0, %v747_v26  ;;  %v716_v35 = vmul.f32 %v1387_v21, %v652_v27  ;;  %v1823_v36 = vadd.f32 %v1776_v40, %v432_v31  ;;  %v1826_v37 = vadd.f32 %v1776_v40, %v472_v32  ;;  %v354_v38 = vpop.f32.mrf.mxu0 }
  0xb7   :  { %v394_v39 = vpop.f32.mrf.mxu1  ;;  %v1391_v41 = vpop.eup %1390  ;;  %v955_v42 = vmul.f32 %v1389_v33, %v763_v18  ;;  %1400 = vrcp.f32 %v859_v28  ;;  %v828_v45 = vadd.f32 2.0, %v700_v30  ;;  %v1829_v46 = vadd.f32 %v1776_v40, %v354_v38 }
  0xb8   :  { %v1393_v47 = vpop.eup %1392  ;;  %v971_v48 = vmul.f32 %v1391_v41, %v779_v22  ;;  %1402 = vrcp.f32 %v875_v34  ;;  %v844_v51 = vadd.f32 2.0, %v716_v35  ;;  %v575_v52 = vmul.f32 1.442695, %v1823_v36 }
  0xb9   :  { %v1395_v55 = vpop.eup %1394  ;;  %v1019_v56 = vsub.f32 %v1779_v43, %v955_v42  ;;  %1404 = vrcp.f32 %v828_v45  ;;  %v668_v58 = vadd.f32 2.0, %v1393_v47  ;;  %v607_v62 = vmul.f32 1.442695, %v1826_v37 }
  0xba   :  { %v1397_v59 = vpop.eup %1396  ;;  %v1035_v60 = vsub.f32 %v1782_v44, %v971_v48  ;;  %1406 = vrcp.f32 %v844_v51  ;;  %v684_v61 = vadd.f32 2.0, %v1395_v55  ;;  %v513_v3 = vmul.f32 1.442695, %v1829_v46 }
  0xbb   :  { %v1399_v63 = vpop.eup %1398  ;;  %1083 = vst [vmem:[%s2362_s3] sm:$0xff] %v1019_v56  ;;  %v732_v1 = vmul.f32 %v1393_v47, %v668_v58  ;;  %v637_v43 = vadd.f32 2.0, %v1397_v59  ;;  %1408 = vpow2.f32 %v575_v52  ;;  %v1846_v12 = vadd.f32 %v1776_v40, %v394_v39 }
  0xbc   :  { %1099 = vst [vmem:[%s2362_s3 + $0x80] sm:$0xff] %v1035_v60  ;;  %v748_v2 = vmul.f32 %v1395_v55, %v684_v61  ;;  %v653_v44 = vadd.f32 2.0, %v1399_v63  ;;  %1410 = vpow2.f32 %v607_v62  ;;  %v812_v33 = vmul.f32 2.0, %v1806_v5 }
  0xbd   :  { %v1401_v6 = vpop.eup %1400  ;;  %v860_v8 = vadd.f32 2.0, %v732_v1  ;;  %v701_v11 = vmul.f32 %v1397_v59, %v637_v43  ;;  %v434_v13 = vpop.f32.mrf.mxu2  ;;  %1412 = vpow2.f32 %v513_v3  ;;  %v545_v23 = vmul.f32 1.442695, %v1846_v12 }
  0xbe   :  { %v474_v14 = vpop.f32.mrf.mxu3  ;;  %v1403_v15 = vpop.eup %1402  ;;  %v987_v16 = vmul.f32 %v1401_v6, %v795_v25  ;;  %v876_v17 = vadd.f32 2.0, %v748_v2  ;;  %v717_v18 = vmul.f32 %v1399_v63, %v653_v44  ;;  %v1857_v35 = vadd.f32 %v1776_v40, %v434_v13 }
  0xbf   :  { %v357_v19 = vpop.f32.mrf.mxu0  ;;  %v1405_v20 = vpop.eup %1404  ;;  %v1003_v21 = vmul.f32 %v1403_v15, %v811_v29  ;;  %1414 = vrcp.f32 %v860_v8  ;;  %v829_v22 = vadd.f32 2.0, %v701_v11  ;;  %v1864_v39 = vadd.f32 %v1776_v40, %v474_v14 }
  0xc0   :  { %v1407_v24 = vpop.eup %1406  ;;  %v1051_v26 = vsub.f32 %v1787_v49, %v987_v16  ;;  %v956_v27 = vmul.f32 %v1405_v20, %v764_v57  ;;  %1416 = vrcp.f32 %v876_v17  ;;  %v845_v28 = vadd.f32 2.0, %v717_v18  ;;  %v397_v30 = vpop.f32.mrf.mxu1 }
  0xc1   :  { %v1409_v31 = vpop.eup %1408  ;;  %v1067_v25 = vsub.f32 %v1790_v50, %v1003_v21  ;;  %v972_v32 = vmul.f32 %v1407_v24, %v780_v0  ;;  %1418 = vrcp.f32 %v829_v22  ;;  %v577_v45 = vmul.f32 1.442695, %v1857_v35 }
  0xc2   :  { %v1411_v34 = vpop.eup %1410  ;;  %1115 = vst [vmem:[%s2362_s3 + $0x100] sm:$0xff] %v1051_v26  ;;  %v1020_v29 = vsub.f32 %v1793_v53, %v956_v27  ;;  %1420 = vrcp.f32 %v845_v28  ;;  %v669_v49 = vadd.f32 2.0, %v1409_v31  ;;  %v765_v53 = vmul.f32 2.0, %v1809_v9 }
  0xc3   :  { %1131 = vst [vmem:[%s2362_s3 + $0x180] sm:$0xff] %v1067_v25  ;;  %v1036_v50 = vsub.f32 %v1796_v54, %v972_v32  ;;  %v685_v38 = vadd.f32 2.0, %v1411_v34  ;;  %1422 = vpow2.f32 %v545_v23  ;;  %v1413_v41 = vpop.eup %1412  ;;  %v1872_v47 = vadd.f32 %v1776_v40, %v357_v19 }
  0xc4   :  { %1084 = vst [vmem:[%s2362_s3 + $0x8] sm:$0xff] %v1020_v29  ;;  %v733_v42 = vmul.f32 %v1409_v31, %v669_v49  ;;  %v781_v54 = vmul.f32 2.0, %v1812_v10  ;;  %v638_v52 = vadd.f32 2.0, %v1413_v41  ;;  %v609_v55 = vmul.f32 1.442695, %v1864_v39 }
  0xc5   :  { %v1415_v48 = vpop.eup %1414  ;;  %1100 = vst [vmem:[%s2362_s3 + $0x88] sm:$0xff] %v1036_v50  ;;  %v749_v51 = vmul.f32 %v1411_v34, %v685_v38  ;;  %v437_v56 = vpop.f32.mrf.mxu2  ;;  %1424 = vpow2.f32 %v577_v45  ;;  %v515_v60 = vmul.f32 1.442695, %v1872_v47  ;;  %v1887_v15 = vadd.f32 %v1776_v40, %v397_v30 }
  0xc6   :  { %v1417_v57 = vpop.eup %1416  ;;  %v988_v58 = vmul.f32 %v1415_v48, %v796_v7  ;;  %v861_v59 = vadd.f32 2.0, %v733_v42  ;;  %v702_v0 = vmul.f32 %v1413_v41, %v638_v52  ;;  %1426 = vpow2.f32 %v609_v55  ;;  %v477_v1 = vpop.f32.mrf.mxu3 }
  0xc7   :  { %v1419_v61 = vpop.eup %1418  ;;  %v1004_v62 = vmul.f32 %v1417_v57, %v812_v33  ;;  %v877_v63 = vadd.f32 2.0, %v749_v51  ;;  %v359_v43 = vpop.f32.mrf.mxu0  ;;  %v1894_v16 = vadd.f32 %v1776_v40, %v437_v56  ;;  %v1897_v17 = vadd.f32 %v1776_v40, %v477_v1 }
  0xc8   :  { %v1421_v2 = vpop.eup %1420  ;;  %v1052_v44 = vsub.f32 %v1803_v4, %v988_v58  ;;  %v957_v3 = vmul.f32 %v1419_v61, %v765_v53  ;;  %1428 = vrcp.f32 %v861_v59  ;;  %v830_v11 = vadd.f32 2.0, %v702_v0  ;;  %v399_v4 = vpop.f32.mrf.mxu1 }
  0xc9   :  { %v1423_v6 = vpop.eup %1422  ;;  %v1068_v8 = vsub.f32 %v1806_v5, %v1004_v62  ;;  %v973_v7 = vmul.f32 %v1421_v2, %v781_v54  ;;  %1430 = vrcp.f32 %v877_v63  ;;  %v797_v18 = vmul.f32 2.0, %v1823_v36 }
  0xca   :  { %1116 = vst [vmem:[%s2362_s3 + $0x108] sm:$0xff] %v1052_v44  ;;  %v1021_v13 = vsub.f32 %v1809_v9, %v957_v3  ;;  %v654_v14 = vadd.f32 2.0, %v1423_v6  ;;  %1432 = vpow2.f32 %v515_v60  ;;  %v547_v20 = vmul.f32 1.442695, %v1887_v15 }
  0xcb   :  { %1132 = vst [vmem:[%s2362_s3 + $0x188] sm:$0xff] %v1068_v8  ;;  %v1037_v5 = vsub.f32 %v1812_v10, %v973_v7  ;;  %1434 = vrcp.f32 %v830_v11  ;;  %v1425_v9 = vpop.eup %1424  ;;  %v1905_v21 = vadd.f32 %v1776_v40, %v359_v43  ;;  %v813_v22 = vmul.f32 2.0, %v1826_v37 }
  0xcc   :  { %1085 = vst [vmem:[%s2362_s3 + $0x10] sm:$0xff] %v1021_v13  ;;  %v718_v19 = vmul.f32 %v1423_v6, %v654_v14  ;;  %v1427_v10 = vpop.eup %1426  ;;  %v766_v23 = vmul.f32 2.0, %v1829_v46  ;;  %v670_v24 = vadd.f32 2.0, %v1425_v9  ;;  %v579_v26 = vmul.f32 1.442695, %v1894_v16 }
  0xcd   :  { %1101 = vst [vmem:[%s2362_s3 + $0x90] sm:$0xff] %v1037_v5  ;;  %v686_v30 = vadd.f32 2.0, %v1427_v10  ;;  %1436 = vpow2.f32 %v547_v20  ;;  %v611_v31 = vmul.f32 1.442695, %v1897_v17  ;;  %v439_v25 = vpop.f32.mrf.mxu2  ;;  %v517_v29 = vmul.f32 1.442695, %v1905_v21 }
  0xce   :  { %v1429_v27 = vpop.eup %1428  ;;  %v846_v28 = vadd.f32 2.0, %v718_v19  ;;  %v734_v34 = vmul.f32 %v1425_v9, %v670_v24  ;;  %1438 = vpow2.f32 %v579_v26  ;;  %v782_v38 = vmul.f32 2.0, %v1846_v12  ;;  %v479_v54 = vpop.f32.mrf.mxu3 }
  0xcf   :  { %v1431_v32 = vpop.eup %1430  ;;  %v989_v33 = vmul.f32 %v1429_v27, %v797_v18  ;;  %v750_v41 = vmul.f32 %v1427_v10, %v686_v30  ;;  %v362_v51 = vpop.f32.mrf.mxu0  ;;  %v1922_v58 = vadd.f32 %v1776_v40, %v399_v4  ;;  %v1932_v60 = vadd.f32 %v1776_v40, %v479_v54 }
  0xd0   :  { %v1433_v49 = vpop.eup %1432  ;;  %v1005_v50 = vmul.f32 %v1431_v32, %v813_v22  ;;  %1440 = vrcp.f32 %v846_v28  ;;  %v862_v45 = vadd.f32 2.0, %v734_v34  ;;  %v1935_v61 = vadd.f32 %v1776_v40, %v362_v51  ;;  %v402_v62 = vpop.f32.mrf.mxu1 }
  0xd1   :  { %v1435_v53 = vpop.eup %1434  ;;  %v1053_v42 = vsub.f32 %v1823_v36, %v989_v33  ;;  %v639_v48 = vadd.f32 2.0, %v1433_v49  ;;  %1442 = vpow2.f32 %v611_v31  ;;  %v878_v56 = vadd.f32 2.0, %v750_v41 }
  0xd2   :  { %v1069_v52 = vsub.f32 %v1826_v37, %v1005_v50  ;;  %v958_v55 = vmul.f32 %v1435_v53, %v766_v23  ;;  %1444 = vpow2.f32 %v517_v29  ;;  %v1925_v36 = vadd.f32 %v1776_v40, %v439_v25 }
  0xd3   :  { %1117 = vst [vmem:[%s2362_s3 + $0x110] sm:$0xff] %v1053_v42  ;;  %1446 = vrcp.f32 %v862_v45  ;;  %v703_v57 = vmul.f32 %v1433_v49, %v639_v48  ;;  %v1437_v59 = vpop.eup %1436  ;;  %v798_v0 = vmul.f32 2.0, %v1857_v35  ;;  %v549_v2 = vmul.f32 1.442695, %v1922_v58 }
  0xd4   :  { %1133 = vst [vmem:[%s2362_s3 + $0x190] sm:$0xff] %v1069_v52  ;;  %v1022_v37 = vsub.f32 %v1829_v46, %v958_v55  ;;  %1448 = vrcp.f32 %v878_v56  ;;  %v1439_v63 = vpop.eup %1438  ;;  %v655_v43 = vadd.f32 2.0, %v1437_v59  ;;  %v814_v46 = vmul.f32 2.0, %v1864_v39 }
  0xd5   :  { %v831_v1 = vadd.f32 2.0, %v703_v57  ;;  %v767_v3 = vmul.f32 2.0, %v1872_v47  ;;  %v671_v6 = vadd.f32 2.0, %v1439_v63  ;;  %v581_v8 = vmul.f32 1.442695, %v1925_v36  ;;  %v442_v19 = vpop.f32.mrf.mxu2 }
  0xd6   :  { %v1441_v44 = vpop.eup %1440  ;;  %1086 = vst [vmem:[%s2362_s3 + $0x18] sm:$0xff] %v1022_v37  ;;  %v719_v13 = vmul.f32 %v1437_v59, %v655_v43  ;;  %v613_v14 = vmul.f32 1.442695, %v1932_v60  ;;  %v519_v18 = vmul.f32 1.442695, %v1935_v61  ;;  %v783_v31 = vmul.f32 2.0, %v1887_v15  ;;  %v482_v32 = vpop.f32.mrf.mxu3 }
  0xd7   :  { %v1443_v7 = vpop.eup %1442  ;;  %v974_v11 = vmul.f32 %v1441_v44, %v782_v38  ;;  %1450 = vrcp.f32 %v831_v1  ;;  %v735_v5 = vmul.f32 %v1439_v63, %v671_v6  ;;  %v1954_v34 = vadd.f32 %v1776_v40, %v402_v62  ;;  %v364_v41 = vpop.f32.mrf.mxu0 }
  0xd8   :  { %v1445_v4 = vpop.eup %1444  ;;  %v687_v9 = vadd.f32 2.0, %v1443_v7  ;;  %1452 = vpow2.f32 %v549_v2  ;;  %v847_v22 = vadd.f32 2.0, %v719_v13  ;;  %v1958_v38 = vadd.f32 %v1776_v40, %v442_v19  ;;  %v404_v48 = vpop.f32.mrf.mxu1 }
  0xd9   :  { %v1447_v20 = vpop.eup %1446  ;;  %v1038_v10 = vsub.f32 %v1846_v12, %v974_v11  ;;  %v640_v23 = vadd.f32 2.0, %v1445_v4  ;;  %1454 = vpow2.f32 %v581_v8  ;;  %v863_v27 = vadd.f32 2.0, %v735_v5 }
  0xda   :  { %v1449_v24 = vpop.eup %1448  ;;  %v990_v26 = vmul.f32 %v1447_v20, %v798_v0  ;;  %v751_v28 = vmul.f32 %v1443_v7, %v687_v9  ;;  %1456 = vpow2.f32 %v613_v14  ;;  %v799_v42 = vmul.f32 2.0, %v1894_v16 }
  0xdb   :  { %1102 = vst [vmem:[%s2362_s3 + $0x98] sm:$0xff] %v1038_v10  ;;  %v1006_v30 = vmul.f32 %v1449_v24, %v814_v46  ;;  %1458 = vrcp.f32 %v847_v22  ;;  %v704_v25 = vmul.f32 %v1445_v4, %v640_v23  ;;  %v551_v45 = vmul.f32 1.442695, %v1954_v34 }
  0xdc   :  { %v1054_v12 = vsub.f32 %v1857_v35, %v990_v26  ;;  %1460 = vrcp.f32 %v863_v27  ;;  %v879_v33 = vadd.f32 2.0, %v751_v28  ;;  %v583_v52 = vmul.f32 1.442695, %v1958_v38 }
  0xdd   :  { %v1451_v29 = vpop.eup %1450  ;;  %v1070_v49 = vsub.f32 %v1864_v39, %v1006_v30  ;;  %v832_v50 = vadd.f32 2.0, %v704_v25  ;;  %1462 = vpow2.f32 %v519_v18  ;;  %v815_v39 = vmul.f32 2.0, %v1897_v17  ;;  %v444_v46 = vpop.f32.mrf.mxu2 }
  0xde   :  { %v1453_v53 = vpop.eup %1452  ;;  %1118 = vst [vmem:[%s2362_s3 + $0x118] sm:$0xff] %v1054_v12  ;;  %v959_v35 = vmul.f32 %v1451_v29, %v767_v3  ;;  %1464 = vrcp.f32 %v879_v33  ;;  %v1972_v59 = vadd.f32 %v1776_v40, %v482_v32  ;;  %v1975_v0 = vadd.f32 %v1776_v40, %v364_v41  ;;  %v484_v10 = vpop.f32.mrf.mxu3 }
  0xdf   :  { %v1455_v54 = vpop.eup %1454  ;;  %1134 = vst [vmem:[%s2362_s3 + $0x198] sm:$0xff] %v1070_v49  ;;  %1466 = vrcp.f32 %v832_v50  ;;  %v656_v51 = vadd.f32 2.0, %v1453_v53  ;;  %v784_v24 = vmul.f32 2.0, %v1922_v58  ;;  %v1994_v28 = vadd.f32 %v1776_v40, %v404_v48  ;;  %v367_v30 = vpop.f32.mrf.mxu0 }
  0xe0   :  { %v1457_v55 = vpop.eup %1456  ;;  %v1023_v56 = vsub.f32 %v1872_v47, %v959_v35  ;;  %v672_v57 = vadd.f32 2.0, %v1455_v54  ;;  %1468 = vpow2.f32 %v551_v45  ;;  %v768_v47 = vmul.f32 2.0, %v1905_v21  ;;  %v407_v12 = vpop.f32.mrf.mxu1 }
  0xe1   :  { %v1459_v37 = vpop.eup %1458  ;;  %v720_v62 = vmul.f32 %v1453_v53, %v656_v51  ;;  %v688_v63 = vadd.f32 2.0, %v1457_v55  ;;  %1470 = vpow2.f32 %v583_v52  ;;  %v615_v44 = vmul.f32 1.442695, %v1972_v59 }
  0xe2   :  { %v1461_v1 = vpop.eup %1460  ;;  %1087 = vst [vmem:[%s2362_s3 + $0x20] sm:$0xff] %v1023_v56  ;;  %v975_v43 = vmul.f32 %v1459_v37, %v783_v31  ;;  %v736_v2 = vmul.f32 %v1455_v54, %v672_v57  ;;  %v521_v11 = vmul.f32 1.442695, %v1975_v0  ;;  %v800_v33 = vmul.f32 2.0, %v1925_v36 }
  0xe3   :  { %v1463_v3 = vpop.eup %1462  ;;  %v991_v6 = vmul.f32 %v1461_v1, %v799_v42  ;;  %v848_v8 = vadd.f32 2.0, %v720_v62  ;;  %v752_v7 = vmul.f32 %v1457_v55, %v688_v63  ;;  %1472 = vpow2.f32 %v615_v44 }
  0xe4   :  { %v1465_v13 = vpop.eup %1464  ;;  %v1039_v14 = vsub.f32 %v1887_v15, %v975_v43  ;;  %v864_v4 = vadd.f32 2.0, %v736_v2  ;;  %v641_v5 = vadd.f32 2.0, %v1463_v3  ;;  %v2003_v49 = vadd.f32 %v1776_v40, %v444_v46 }
  0xe5   :  { %v1467_v9 = vpop.eup %1466  ;;  %v1055_v18 = vsub.f32 %v1894_v16, %v991_v6  ;;  %v1007_v19 = vmul.f32 %v1465_v13, %v815_v39  ;;  %1474 = vrcp.f32 %v848_v8  ;;  %v880_v20 = vadd.f32 2.0, %v752_v7  ;;  %v447_v56 = vpop.f32.mrf.mxu2 }
  0xe6   :  { %v1469_v22 = vpop.eup %1468  ;;  %1103 = vst [vmem:[%s2362_s3 + $0xa0] sm:$0xff] %v1039_v14  ;;  %v960_v23 = vmul.f32 %v1467_v9, %v768_v47  ;;  %1476 = vrcp.f32 %v864_v4  ;;  %v705_v15 = vmul.f32 %v1463_v3, %v641_v5  ;;  %v2009_v41 = vadd.f32 %v1776_v40, %v484_v10  ;;  %v487_v6 = vpop.f32.mrf.mxu3 }
  0xe7   :  { %v1471_v26 = vpop.eup %1470  ;;  %1119 = vst [vmem:[%s2362_s3 + $0x120] sm:$0xff] %v1055_v18  ;;  %v1071_v16 = vsub.f32 %v1897_v17, %v1007_v19  ;;  %1478 = vrcp.f32 %v880_v20  ;;  %v657_v27 = vadd.f32 2.0, %v1469_v22  ;;  %v553_v17 = vmul.f32 1.442695, %v1994_v28  ;;  %v369_v18 = vpop.f32.mrf.mxu0 }
  0xe8   :  { %v1024_v31 = vsub.f32 %v1905_v21, %v960_v23  ;;  %v833_v25 = vadd.f32 2.0, %v705_v15  ;;  %v673_v32 = vadd.f32 2.0, %v1471_v26  ;;  %1480 = vpow2.f32 %v521_v11  ;;  %v409_v19 = vpop.f32.mrf.mxu1 }
  0xe9   :  { %1135 = vst [vmem:[%s2362_s3 + $0x1a0] sm:$0xff] %v1071_v16  ;;  %v721_v29 = vmul.f32 %v1469_v22, %v657_v27  ;;  %v1473_v50 = vpop.eup %1472  ;;  %v2012_v53 = vadd.f32 %v1776_v40, %v367_v30  ;;  %v585_v48 = vmul.f32 1.442695, %v2003_v49  ;;  %v816_v51 = vmul.f32 2.0, %v1932_v60 }
  0xea   :  { %1088 = vst [vmem:[%s2362_s3 + $0x28] sm:$0xff] %v1024_v31  ;;  %1482 = vrcp.f32 %v833_v25  ;;  %v737_v21 = vmul.f32 %v1471_v26, %v673_v32  ;;  %v689_v45 = vadd.f32 2.0, %v1473_v50  ;;  %v617_v55 = vmul.f32 1.442695, %v2009_v41 }
  0xeb   :  { %v1475_v35 = vpop.eup %1474  ;;  %v849_v42 = vadd.f32 2.0, %v721_v29  ;;  %1484 = vpow2.f32 %v553_v17  ;;  %v769_v62 = vmul.f32 2.0, %v1935_v61  ;;  %v523_v2 = vmul.f32 1.442695, %v2012_v53 }
  0xec   :  { %v1477_v54 = vpop.eup %1476  ;;  %v976_v39 = vmul.f32 %v1475_v35, %v784_v24  ;;  %v865_v52 = vadd.f32 2.0, %v737_v21  ;;  %v753_v63 = vmul.f32 %v1473_v50, %v689_v45  ;;  %v785_v11 = vmul.f32 2.0, %v1954_v34 }
  0xed   :  { %v1479_v57 = vpop.eup %1478  ;;  %v992_v37 = vmul.f32 %v1477_v54, %v800_v33  ;;  %1486 = vrcp.f32 %v849_v42  ;;  %v2033_v4 = vadd.f32 %v1776_v40, %v447_v56  ;;  %v817_v22 = vmul.f32 2.0, %v1972_v59  ;;  %v449_v17 = vpop.f32.mrf.mxu2 }
  0xee   :  { %v1481_v1 = vpop.eup %1480  ;;  %v1040_v43 = vsub.f32 %v1922_v58, %v976_v39  ;;  %v1008_v47 = vmul.f32 %v1479_v57, %v816_v51  ;;  %1488 = vrcp.f32 %v865_v52  ;;  %v881_v46 = vadd.f32 2.0, %v753_v63 }
  0xef   :  { %v1056_v44 = vsub.f32 %v1925_v36, %v992_v37  ;;  %v642_v3 = vadd.f32 2.0, %v1481_v1  ;;  %1490 = vpow2.f32 %v585_v48  ;;  %v2027_v58 = vadd.f32 %v1776_v40, %v407_v12 }
  0xf0   :  { %v1483_v8 = vpop.eup %1482  ;;  %1104 = vst [vmem:[%s2362_s3 + $0xa8] sm:$0xff] %v1040_v43  ;;  %v1072_v7 = vsub.f32 %v1932_v60, %v1008_v47  ;;  %1492 = vpow2.f32 %v617_v55  ;;  %v801_v60 = vmul.f32 2.0, %v1958_v38  ;;  %v587_v24 = vmul.f32 1.442695, %v2033_v4  ;;  %v489_v55 = vpop.f32.mrf.mxu3 }
  0xf1   :  { %v1485_v13 = vpop.eup %1484  ;;  %1120 = vst [vmem:[%s2362_s3 + $0x128] sm:$0xff] %v1056_v44  ;;  %v961_v36 = vmul.f32 %v1483_v8, %v769_v62  ;;  %1494 = vrcp.f32 %v881_v46  ;;  %v706_v14 = vmul.f32 %v1481_v1, %v642_v3  ;;  %v555_v9 = vmul.f32 1.442695, %v2027_v58 }
  0xf2   :  { %1136 = vst [vmem:[%s2362_s3 + $0x1a8] sm:$0xff] %v1072_v7  ;;  %v658_v5 = vadd.f32 2.0, %v1485_v13  ;;  %1496 = vpow2.f32 %v523_v2  ;;  %v2044_v27 = vadd.f32 %v1776_v40, %v487_v6  ;;  %v2053_v25 = vadd.f32 %v1776_v40, %v409_v19  ;;  %v372_v6 = vpop.f32.mrf.mxu0 }
  0xf3   :  { %v1487_v20 = vpop.eup %1486  ;;  %v1025_v10 = vsub.f32 %v1935_v61, %v961_v36  ;;  %v834_v23 = vadd.f32 2.0, %v706_v14  ;;  %1498 = vpow2.f32 %v555_v9  ;;  %v2050_v61 = vadd.f32 %v1776_v40, %v369_v18 }
  0xf4   :  { %v1489_v15 = vpop.eup %1488  ;;  %v977_v26 = vmul.f32 %v1487_v20, %v785_v11  ;;  %v722_v16 = vmul.f32 %v1485_v13, %v658_v5  ;;  %v770_v35 = vmul.f32 2.0, %v1975_v0  ;;  %v619_v45 = vmul.f32 1.442695, %v2044_v27  ;;  %v412_v20 = vpop.f32.mrf.mxu1 }
  0xf5   :  { %v1491_v30 = vpop.eup %1490  ;;  %1089 = vst [vmem:[%s2362_s3 + $0x30] sm:$0xff] %v1025_v10  ;;  %v993_v31 = vmul.f32 %v1489_v15, %v801_v60  ;;  %1500 = vrcp.f32 %v834_v23  ;;  %v525_v39 = vmul.f32 1.442695, %v2050_v61  ;;  %v557_v62 = vmul.f32 1.442695, %v2053_v25 }
  0xf6   :  { %v1493_v32 = vpop.eup %1492  ;;  %v1041_v12 = vsub.f32 %v1954_v34, %v977_v26  ;;  %v850_v33 = vadd.f32 2.0, %v722_v16  ;;  %v674_v29 = vadd.f32 2.0, %v1491_v30  ;;  %1502 = vpow2.f32 %v587_v24  ;;  %v452_v24 = vpop.f32.mrf.mxu2 }
  0xf7   :  { %v1495_v50 = vpop.eup %1494  ;;  %v1057_v21 = vsub.f32 %v1958_v38, %v993_v31  ;;  %v690_v42 = vadd.f32 2.0, %v1493_v32  ;;  %v786_v38 = vmul.f32 2.0, %v1994_v28  ;;  %v802_v1 = vmul.f32 2.0, %v2003_v49 }
  0xf8   :  { %v1497_v48 = vpop.eup %1496  ;;  %1105 = vst [vmem:[%s2362_s3 + $0xb0] sm:$0xff] %v1041_v12  ;;  %v1009_v54 = vmul.f32 %v1495_v50, %v817_v22  ;;  %1504 = vrcp.f32 %v850_v33  ;;  %v738_v34 = vmul.f32 %v1491_v30, %v674_v29  ;;  %v2074_v3 = vadd.f32 %v1776_v40, %v449_v17  ;;  %v492_v50 = vpop.f32.mrf.mxu3 }
  0xf9   :  { %1121 = vst [vmem:[%s2362_s3 + $0x130] sm:$0xff] %v1057_v21  ;;  %v754_v51 = vmul.f32 %v1493_v32, %v690_v42  ;;  %v643_v52 = vadd.f32 2.0, %v1497_v48  ;;  %1506 = vpow2.f32 %v619_v45  ;;  %v1499_v56 = vpop.eup %1498  ;;  %v818_v14 = vmul.f32 2.0, %v2009_v41 }
  0xfa   :  { %v1073_v57 = vsub.f32 %v1972_v59, %v1009_v54  ;;  %v866_v37 = vadd.f32 2.0, %v738_v34  ;;  %1508 = vpow2.f32 %v525_v39  ;;  %v659_v2 = vadd.f32 2.0, %v1499_v56 }
  0xfb   :  { %v1501_v63 = vpop.eup %1500  ;;  %v882_v43 = vadd.f32 2.0, %v754_v51  ;;  %v707_v47 = vmul.f32 %v1497_v48, %v643_v52  ;;  %v2077_v59 = vadd.f32 %v1776_v40, %v489_v55  ;;  %v589_v60 = vmul.f32 1.442695, %v2074_v3 }
  0xfc   :  { %v1503_v44 = vpop.eup %1502  ;;  %1137 = vst [vmem:[%s2362_s3 + $0x1b0] sm:$0xff] %v1073_v57  ;;  %v962_v46 = vmul.f32 %v1501_v63, %v770_v35  ;;  %1510 = vrcp.f32 %v866_v37  ;;  %v723_v7 = vmul.f32 %v1499_v56, %v659_v2  ;;  %v771_v22 = vmul.f32 2.0, %v2012_v53  ;;  %v374_v57 = vpop.f32.mrf.mxu0 }
  0xfd   :  { %1512 = vrcp.f32 %v882_v43  ;;  %v835_v8 = vadd.f32 2.0, %v707_v47  ;;  %v675_v11 = vadd.f32 2.0, %v1503_v44  ;;  %v2089_v32 = vadd.f32 %v1776_v40, %v372_v6 }
  0xfe   :  { %v1505_v13 = vpop.eup %1504  ;;  %v1026_v36 = vsub.f32 %v1975_v0, %v962_v46  ;;  %1514 = vpow2.f32 %v557_v62  ;;  %v851_v18 = vadd.f32 2.0, %v723_v7  ;;  %v621_v0 = vmul.f32 1.442695, %v2077_v59 }
  0xff   :  { %v1507_v5 = vpop.eup %1506  ;;  %v978_v9 = vmul.f32 %v1505_v13, %v786_v38  ;;  %1516 = vrcp.f32 %v835_v8  ;;  %v739_v19 = vmul.f32 %v1503_v44, %v675_v11  ;;  %v2092_v12 = vadd.f32 %v1776_v40, %v412_v20  ;;  %v414_v8 = vpop.f32.mrf.mxu1 }
 0x100   :  { %v1509_v10 = vpop.eup %1508  ;;  %1090 = vst [vmem:[%s2362_s3 + $0x38] sm:$0xff] %v1026_v36  ;;  %v691_v23 = vadd.f32 2.0, %v1507_v5  ;;  %1518 = vpow2.f32 %v589_v60  ;;  %v2098_v17 = vadd.f32 %v1776_v40, %v452_v24  ;;  %v787_v42 = vmul.f32 2.0, %v2027_v58  ;;  %v454_v36 = vpop.f32.mrf.mxu2 }
 0x101   :  { %v1042_v15 = vsub.f32 %v1994_v28, %v978_v9  ;;  %1520 = vrcp.f32 %v851_v18  ;;  %v867_v26 = vadd.f32 2.0, %v739_v19  ;;  %v644_v16 = vadd.f32 2.0, %v1509_v10  ;;  %v494_v24 = vpop.f32.mrf.mxu3 }
 0x102   :  { %v1511_v30 = vpop.eup %1510  ;;  %v755_v31 = vmul.f32 %v1507_v5, %v691_v23  ;;  %1522 = vpow2.f32 %v621_v0  ;;  %v527_v48 = vmul.f32 1.442695, %v2089_v32  ;;  %v559_v51 = vmul.f32 1.442695, %v2092_v12 }
 0x103   :  { %v1513_v33 = vpop.eup %1512  ;;  %1106 = vst [vmem:[%s2362_s3 + $0xb8] sm:$0xff] %v1042_v15  ;;  %v994_v29 = vmul.f32 %v1511_v30, %v802_v1  ;;  %1524 = vrcp.f32 %v867_v26  ;;  %v708_v28 = vmul.f32 %v1509_v10, %v644_v16  ;;  %v803_v56 = vmul.f32 2.0, %v2033_v4 }
 0x104   :  { %v1515_v21 = vpop.eup %1514  ;;  %v1010_v35 = vmul.f32 %v1513_v33, %v818_v14  ;;  %v883_v45 = vadd.f32 2.0, %v755_v31  ;;  %v591_v63 = vmul.f32 1.442695, %v2098_v17  ;;  %v819_v47 = vmul.f32 2.0, %v2044_v27 }
 0x105   :  { %v1517_v54 = vpop.eup %1516  ;;  %v1058_v34 = vsub.f32 %v2003_v49, %v994_v29  ;;  %v836_v39 = vadd.f32 2.0, %v708_v28  ;;  %v660_v38 = vadd.f32 2.0, %v1515_v21  ;;  %v772_v18 = vmul.f32 2.0, %v2050_v61 }
 0x106   :  { %v1519_v52 = vpop.eup %1518  ;;  %v1074_v55 = vsub.f32 %v2009_v41, %v1010_v35  ;;  %v963_v40 = vmul.f32 %v1517_v54, %v771_v22  ;;  %1526 = vrcp.f32 %v883_v45  ;;  %v788_v26 = vmul.f32 2.0, %v2053_v25 }
 0x107   :  { %v1521_v37 = vpop.eup %1520  ;;  %1122 = vst [vmem:[%s2362_s3 + $0x138] sm:$0xff] %v1058_v34  ;;  %1528 = vrcp.f32 %v836_v39  ;;  %v724_v62 = vmul.f32 %v1515_v21, %v660_v38  ;;  %v676_v49 = vadd.f32 2.0, %v1519_v52  ;;  %v804_v33 = vmul.f32 2.0, %v2074_v3 }
 0x108   :  { %v1523_v1 = vpop.eup %1522  ;;  %1138 = vst [vmem:[%s2362_s3 + $0x1b8] sm:$0xff] %v1074_v55  ;;  %v1027_v41 = vsub.f32 %v2012_v53, %v963_v40  ;;  %v979_v43 = vmul.f32 %v1521_v37, %v787_v42  ;;  %1530 = vpow2.f32 %v527_v48  ;;  %v2122_v53 = vld [vmem:[%s2360_s2] ss:$0 sm:$0xff]  ;;  %v377_v42 = vpop.f32.mrf.mxu0  ;;  %v820_v34 = vmul.f32 2.0, %v2077_v59 }
 0x109   :  { %v1525_v2 = vpop.eup %1524  ;;  %v852_v44 = vadd.f32 2.0, %v724_v62  ;;  %v740_v46 = vmul.f32 %v1519_v52, %v676_v49  ;;  %v692_v6 = vadd.f32 2.0, %v1523_v1  ;;  %1532 = vpow2.f32 %v559_v51 }
 0x10a   :  { %1091 = vst [vmem:[%s2362_s3 + $0x40] sm:$0xff] %v1027_v41  ;;  %v1043_v7 = vsub.f32 %v2027_v58, %v979_v43  ;;  %v995_v11 = vmul.f32 %v1525_v2, %v803_v56  ;;  %1534 = vpow2.f32 %v591_v63  ;;  %v2125_v13 = vadd.f32 %v2122_v53, %v492_v50 }
 0x10b   :  { %1536 = vrcp.f32 %v852_v44  ;;  %v868_v14 = vadd.f32 2.0, %v740_v46  ;;  %v756_v60 = vmul.f32 %v1523_v1, %v692_v6  ;;  %v2128_v5 = vadd.f32 %v2122_v53, %v374_v57  ;;  %v417_v57 = vpop.f32.mrf.mxu1  ;;  %v457_v1 = vpop.f32.mrf.mxu2 }
 0x10c   :  { %v1527_v9 = vpop.eup %1526  ;;  %1107 = vst [vmem:[%s2362_s3 + $0xc0] sm:$0xff] %v1043_v7  ;;  %v1059_v58 = vsub.f32 %v2033_v4, %v995_v11  ;;  %v623_v19 = vmul.f32 1.442695, %v2125_v13  ;;  %v2137_v20 = vadd.f32 %v2122_v53, %v414_v8  ;;  %v2149_v35 = vadd.f32 %v2122_v53, %v454_v36 }
 0x10d   :  { %v1529_v10 = vpop.eup %1528  ;;  %v1011_v22 = vmul.f32 %v1527_v9, %v819_v47  ;;  %1538 = vrcp.f32 %v868_v14  ;;  %v884_v23 = vadd.f32 2.0, %v756_v60  ;;  %v529_v0 = vmul.f32 1.442695, %v2128_v5  ;;  %v497_v14 = vpop.f32.mrf.mxu3 }
 0x10e   :  { %v1531_v15 = vpop.eup %1530  ;;  %1123 = vst [vmem:[%s2362_s3 + $0x140] sm:$0xff] %v1059_v58  ;;  %v964_v4 = vmul.f32 %v1529_v10, %v772_v18  ;;  %1540 = vpow2.f32 %v623_v19  ;;  %v561_v16 = vmul.f32 1.442695, %v2137_v20  ;;  %v2155_v54 = vadd.f32 %v2122_v53, %v494_v24 }
 0x10f   :  { %v1533_v30 = vpop.eup %1532  ;;  %v1075_v31 = vsub.f32 %v2044_v27, %v1011_v22  ;;  %1542 = vrcp.f32 %v884_v23  ;;  %v645_v29 = vadd.f32 2.0, %v1531_v15  ;;  %v593_v38 = vmul.f32 1.442695, %v2149_v35 }
 0x110   :  { %v1535_v28 = vpop.eup %1534  ;;  %v1028_v50 = vsub.f32 %v2050_v61, %v964_v4  ;;  %v661_v21 = vadd.f32 2.0, %v1533_v30  ;;  %1544 = vpow2.f32 %v529_v0  ;;  %v773_v52 = vmul.f32 2.0, %v2089_v32  ;;  %v379_v24 = vpop.f32.mrf.mxu0 }
 0x111   :  { %v1537_v45 = vpop.eup %1536  ;;  %1139 = vst [vmem:[%s2362_s3 + $0x1c0] sm:$0xff] %v1075_v31  ;;  %v709_v48 = vmul.f32 %v1531_v15, %v645_v29  ;;  %v677_v27 = vadd.f32 2.0, %v1535_v28  ;;  %1546 = vpow2.f32 %v561_v16  ;;  %v625_v56 = vmul.f32 1.442695, %v2155_v54 }
 0x112   :  { %1092 = vst [vmem:[%s2362_s3 + $0x48] sm:$0xff] %v1028_v50  ;;  %v980_v61 = vmul.f32 %v1537_v45, %v788_v26  ;;  %v725_v39 = vmul.f32 %v1533_v30, %v661_v21  ;;  %1548 = vpow2.f32 %v593_v38  ;;  %v2166_v2 = vadd.f32 %v2122_v53, %v377_v42 }
 0x113   :  { %v1539_v51 = vpop.eup %1538  ;;  %v837_v55 = vadd.f32 2.0, %v709_v48  ;;  %v741_v40 = vmul.f32 %v1535_v28, %v677_v27  ;;  %v805_v22 = vmul.f32 2.0, %v2098_v17  ;;  %v2187_v0 = vadd.f32 %v2122_v53, %v457_v1 }
 0x114   :  { %v1541_v37 = vpop.eup %1540  ;;  %v1044_v62 = vsub.f32 %v2053_v25, %v980_v61  ;;  %v996_v49 = vmul.f32 %v1539_v51, %v804_v33  ;;  %v853_v63 = vadd.f32 2.0, %v725_v39  ;;  %v2173_v25 = vadd.f32 %v2122_v53, %v417_v57  ;;  %v459_v39 = vpop.f32.mrf.mxu2 }
 0x115   :  { %v1543_v41 = vpop.eup %1542  ;;  %1550 = vrcp.f32 %v837_v55  ;;  %v869_v43 = vadd.f32 2.0, %v741_v40  ;;  %v693_v47 = vadd.f32 2.0, %v1541_v37  ;;  %v531_v36 = vmul.f32 1.442695, %v2166_v2 }
 0x116   :  { %v1545_v44 = vpop.eup %1544  ;;  %1108 = vst [vmem:[%s2362_s3 + $0xc8] sm:$0xff] %v1044_v62  ;;  %v1060_v46 = vsub.f32 %v2074_v3, %v996_v49  ;;  %v1012_v6 = vmul.f32 %v1543_v41, %v820_v34  ;;  %1552 = vrcp.f32 %v853_v63  ;;  %v789_v3 = vmul.f32 2.0, %v2092_v12  ;;  %v419_v34 = vpop.f32.mrf.mxu1 }
 0x117   :  { %v1547_v8 = vpop.eup %1546  ;;  %1554 = vrcp.f32 %v869_v43  ;;  %v757_v7 = vmul.f32 %v1541_v37, %v693_v47  ;;  %v646_v11 = vadd.f32 2.0, %v1545_v44  ;;  %v563_v19 = vmul.f32 1.442695, %v2173_v25  ;;  %v499_v49 = vpop.f32.mrf.mxu3 }
 0x118   :  { %1124 = vst [vmem:[%s2362_s3 + $0x148] sm:$0xff] %v1060_v46  ;;  %v1076_v60 = vsub.f32 %v2077_v59, %v1012_v6  ;;  %v662_v9 = vadd.f32 2.0, %v1547_v8  ;;  %1556 = vpow2.f32 %v625_v56  ;;  %v1549_v10 = vpop.eup %1548  ;;  %v2190_v59 = vadd.f32 %v2122_v53, %v497_v14 }
 0x119   :  { %v885_v58 = vadd.f32 2.0, %v757_v7  ;;  %v710_v18 = vmul.f32 %v1545_v44, %v646_v11  ;;  %1558 = vpow2.f32 %v531_v36  ;;  %v821_v4 = vmul.f32 2.0, %v2125_v13 }
 0x11a   :  { %1140 = vst [vmem:[%s2362_s3 + $0x1c8] sm:$0xff] %v1076_v60  ;;  %v726_v23 = vmul.f32 %v1547_v8, %v662_v9  ;;  %v678_v16 = vadd.f32 2.0, %v1549_v10  ;;  %v595_v29 = vmul.f32 1.442695, %v2187_v0  ;;  %v2195_v42 = vadd.f32 %v2122_v53, %v379_v24  ;;  %v382_v60 = vpop.f32.mrf.mxu0 }
 0x11b   :  { %v1551_v15 = vpop.eup %1550  ;;  %1560 = vrcp.f32 %v885_v58  ;;  %v838_v26 = vadd.f32 2.0, %v710_v18  ;;  %v627_v61 = vmul.f32 1.442695, %v2190_v59  ;;  %v2214_v41 = vadd.f32 %v2122_v53, %v419_v34 }
 0x11c   :  { %v1553_v30 = vpop.eup %1552  ;;  %v965_v31 = vmul.f32 %v1551_v15, %v773_v52  ;;  %v854_v33 = vadd.f32 2.0, %v726_v23  ;;  %1562 = vpow2.f32 %v563_v19  ;;  %v742_v21 = vmul.f32 %v1549_v10, %v678_v16 }
 0x11d   :  { %v1555_v28 = vpop.eup %1554  ;;  %v981_v50 = vmul.f32 %v1553_v30, %v789_v3  ;;  %1564 = vrcp.f32 %v838_v26  ;;  %v533_v62 = vmul.f32 1.442695, %v2195_v42  ;;  %v2217_v43 = vadd.f32 %v2122_v53, %v459_v39 }
 0x11e   :  { %v1557_v45 = vpop.eup %1556  ;;  %v1029_v48 = vsub.f32 %v2089_v32, %v965_v31  ;;  %v997_v27 = vmul.f32 %v1555_v28, %v805_v22  ;;  %1566 = vrcp.f32 %v854_v33  ;;  %v870_v52 = vadd.f32 2.0, %v742_v21  ;;  %v462_v31 = vpop.f32.mrf.mxu2 }
 0x11f   :  { %v1559_v38 = vpop.eup %1558  ;;  %v1045_v51 = vsub.f32 %v2092_v12, %v981_v50  ;;  %v694_v55 = vadd.f32 2.0, %v1557_v45  ;;  %1568 = vpow2.f32 %v595_v29  ;;  %v774_v32 = vmul.f32 2.0, %v2128_v5 }
 0x120   :  { %1093 = vst [vmem:[%s2362_s3 + $0x50] sm:$0xff] %v1029_v48  ;;  %v1061_v40 = vsub.f32 %v2098_v17, %v997_v27  ;;  %v647_v56 = vadd.f32 2.0, %v1559_v38  ;;  %1570 = vpow2.f32 %v627_v61  ;;  %v790_v12 = vmul.f32 2.0, %v2137_v20 }
 0x121   :  { %v1561_v57 = vpop.eup %1560  ;;  %1109 = vst [vmem:[%s2362_s3 + $0xd0] sm:$0xff] %v1045_v51  ;;  %1572 = vrcp.f32 %v870_v52  ;;  %v758_v37 = vmul.f32 %v1557_v45, %v694_v55  ;;  %v806_v44 = vmul.f32 2.0, %v2149_v35  ;;  %v565_v14 = vmul.f32 1.442695, %v2214_v41 }
 0x122   :  { %v1563_v63 = vpop.eup %1562  ;;  %1125 = vst [vmem:[%s2362_s3 + $0x150] sm:$0xff] %v1061_v40  ;;  %v1013_v17 = vmul.f32 %v1561_v57, %v821_v4  ;;  %v711_v1 = vmul.f32 %v1559_v38, %v647_v56  ;;  %1574 = vpow2.f32 %v533_v62  ;;  %v2223_v18 = vadd.f32 %v2122_v53, %v499_v49  ;;  %v502_v38 = vpop.f32.mrf.mxu3 }
 0x123   :  { %v1565_v47 = vpop.eup %1564  ;;  %v886_v46 = vadd.f32 2.0, %v758_v37  ;;  %v663_v6 = vadd.f32 2.0, %v1563_v63  ;;  %v597_v22 = vmul.f32 1.442695, %v2217_v43  ;;  %v822_v16 = vmul.f32 2.0, %v2155_v54 }
 0x124   :  { %v1567_v8 = vpop.eup %1566  ;;  %v1077_v7 = vsub.f32 %v2125_v13, %v1013_v17  ;;  %v966_v11 = vmul.f32 %v1565_v47, %v774_v32  ;;  %v839_v36 = vadd.f32 2.0, %v711_v1  ;;  %v629_v28 = vmul.f32 1.442695, %v2223_v18 }
 0x125   :  { %v1569_v3 = vpop.eup %1568  ;;  %v982_v9 = vmul.f32 %v1567_v8, %v790_v12  ;;  %1576 = vrcp.f32 %v886_v46  ;;  %v727_v58 = vmul.f32 %v1563_v63, %v663_v6  ;;  %v2242_v48 = vadd.f32 %v2122_v53, %v382_v60  ;;  %v384_v63 = vpop.f32.mrf.mxu0 }
 0x126   :  { %v1571_v19 = vpop.eup %1570  ;;  %1141 = vst [vmem:[%s2362_s3 + $0x1d0] sm:$0xff] %v1077_v7  ;;  %v1030_v10 = vsub.f32 %v2128_v5, %v966_v11  ;;  %1578 = vrcp.f32 %v839_v36  ;;  %v679_v13 = vadd.f32 2.0, %v1569_v3  ;;  %v422_v5 = vpop.f32.mrf.mxu1  ;;  %v2248_v39 = vadd.f32 %v2122_v53, %v462_v31 }
 0x127   :  { %v1573_v23 = vpop.eup %1572  ;;  %v1046_v24 = vsub.f32 %v2137_v20, %v982_v9  ;;  %v855_v15 = vadd.f32 2.0, %v727_v58  ;;  %v695_v4 = vadd.f32 2.0, %v1571_v19  ;;  %1580 = vpow2.f32 %v565_v14  ;;  %v464_v31 = vpop.f32.mrf.mxu2 }
 0x128   :  { %1094 = vst [vmem:[%s2362_s3 + $0x58] sm:$0xff] %v1030_v10  ;;  %v998_v26 = vmul.f32 %v1573_v23, %v806_v44  ;;  %v743_v30 = vmul.f32 %v1569_v3, %v679_v13  ;;  %1582 = vpow2.f32 %v597_v22  ;;  %v1575_v33 = vpop.eup %1574  ;;  %v775_v20 = vmul.f32 2.0, %v2166_v2 }
 0x129   :  { %1110 = vst [vmem:[%s2362_s3 + $0xd8] sm:$0xff] %v1046_v24  ;;  %1584 = vrcp.f32 %v855_v15  ;;  %v759_v29 = vmul.f32 %v1571_v19, %v695_v4  ;;  %v648_v45 = vadd.f32 2.0, %v1575_v33  ;;  %v2245_v34 = vadd.f32 %v2122_v53, %v422_v5 }
 0x12a   :  { %v1062_v50 = vsub.f32 %v2149_v35, %v998_v26  ;;  %v871_v21 = vadd.f32 2.0, %v743_v30  ;;  %1586 = vpow2.f32 %v629_v28  ;;  %v535_v55 = vmul.f32 1.442695, %v2242_v48 }
 0x12b   :  { %v1577_v27 = vpop.eup %1576  ;;  %v887_v61 = vadd.f32 2.0, %v759_v29  ;;  %v712_v52 = vmul.f32 %v1575_v33, %v648_v45  ;;  %v791_v56 = vmul.f32 2.0, %v2173_v25  ;;  %v567_v57 = vmul.f32 1.442695, %v2245_v34  ;;  %v504_v33 = vpop.f32.mrf.mxu3 }
 0x12c   :  { %v1579_v51 = vpop.eup %1578  ;;  %1126 = vst [vmem:[%s2362_s3 + $0x158] sm:$0xff] %v1062_v50  ;;  %v1014_v35 = vmul.f32 %v1577_v27, %v822_v16  ;;  %1588 = vrcp.f32 %v871_v21  ;;  %v807_v47 = vmul.f32 2.0, %v2187_v0  ;;  %v2268_v11 = vadd.f32 %v2122_v53, %v502_v38 }
 0x12d   :  { %v1581_v40 = vpop.eup %1580  ;;  %v967_v32 = vmul.f32 %v1579_v51, %v775_v20  ;;  %1590 = vrcp.f32 %v887_v61  ;;  %v840_v62 = vadd.f32 2.0, %v712_v52  ;;  %v2271_v36 = vadd.f32 %v2122_v53, %v384_v63 }
 0x12e   :  { %v1583_v12 = vpop.eup %1582  ;;  %v1078_v37 = vsub.f32 %v2155_v54, %v1014_v35  ;;  %v664_v49 = vadd.f32 2.0, %v1581_v40  ;;  %1592 = vpow2.f32 %v535_v55  ;;  %v599_v54 = vmul.f32 1.442695, %v2248_v39  ;;  %v424_v4 = vpop.f32.mrf.mxu1 }
 0x12f   :  { %v1585_v17 = vpop.eup %1584  ;;  %v1031_v1 = vsub.f32 %v2166_v2, %v967_v32  ;;  %v680_v44 = vadd.f32 2.0, %v1583_v12  ;;  %1594 = vpow2.f32 %v567_v57  ;;  %v823_v2 = vmul.f32 2.0, %v2190_v59 }
 0x130   :  { %1142 = vst [vmem:[%s2362_s3 + $0x1d8] sm:$0xff] %v1078_v37  ;;  %v983_v46 = vmul.f32 %v1585_v17, %v791_v56  ;;  %1596 = vrcp.f32 %v840_v62  ;;  %v728_v6 = vmul.f32 %v1581_v40, %v664_v49  ;;  %v1587_v8 = vpop.eup %1586  ;;  %v776_v10 = vmul.f32 2.0, %v2195_v42 }
 0x131   :  { %1095 = vst [vmem:[%s2362_s3 + $0x60] sm:$0xff] %v1031_v1  ;;  %v744_v7 = vmul.f32 %v1583_v12, %v680_v44  ;;  %v696_v9 = vadd.f32 2.0, %v1587_v8  ;;  %1598 = vpow2.f32 %v599_v54  ;;  %v631_v22 = vmul.f32 1.442695, %v2268_v11 }
 0x132   :  { %v1589_v14 = vpop.eup %1588  ;;  %v1047_v60 = vsub.f32 %v2173_v25, %v983_v46  ;;  %v856_v3 = vadd.f32 2.0, %v728_v6  ;;  %v537_v25 = vmul.f32 1.442695, %v2271_v36  ;;  %v792_v30 = vmul.f32 2.0, %v2214_v41 }
 0x133   :  { %v1591_v58 = vpop.eup %1590  ;;  %v999_v19 = vmul.f32 %v1589_v14, %v807_v47  ;;  %v872_v13 = vadd.f32 2.0, %v744_v7  ;;  %v760_v15 = vmul.f32 %v1587_v8, %v696_v9  ;;  %v2293_v61 = vadd.f32 %v2122_v53, %v464_v31 }
 0x134   :  { %v1593_v23 = vpop.eup %1592  ;;  %1111 = vst [vmem:[%s2362_s3 + $0xe0] sm:$0xff] %v1047_v60  ;;  %v1015_v24 = vmul.f32 %v1591_v58, %v823_v2  ;;  %1600 = vrcp.f32 %v856_v3  ;;  %v2296_v38 = vadd.f32 %v2122_v53, %v504_v33  ;;  %v808_v32 = vmul.f32 2.0, %v2217_v43 }
 0x135   :  { %v1595_v26 = vpop.eup %1594  ;;  %v1063_v16 = vsub.f32 %v2187_v0, %v999_v19  ;;  %1602 = vrcp.f32 %v872_v13  ;;  %v649_v5 = vadd.f32 2.0, %v1593_v23  ;;  %v888_v28 = vadd.f32 2.0, %v760_v15 }
 0x136   :  { %v1597_v20 = vpop.eup %1596  ;;  %v1079_v29 = vsub.f32 %v2190_v59, %v1015_v24  ;;  %v665_v50 = vadd.f32 2.0, %v1595_v26  ;;  %1604 = vpow2.f32 %v631_v22  ;;  %v2287_v0 = vadd.f32 %v2122_v53, %v424_v4 }
 0x137   :  { %1127 = vst [vmem:[%s2362_s3 + $0x160] sm:$0xff] %v1063_v16  ;;  %v968_v21 = vmul.f32 %v1597_v20, %v776_v10  ;;  %v713_v45 = vmul.f32 %v1593_v23, %v649_v5  ;;  %1606 = vpow2.f32 %v537_v25  ;;  %v1599_v27 = vpop.eup %1598  ;;  %v601_v57 = vmul.f32 1.442695, %v2293_v61 }
 0x138   :  { %1143 = vst [vmem:[%s2362_s3 + $0x1e0] sm:$0xff] %v1079_v29  ;;  %1608 = vrcp.f32 %v888_v28  ;;  %v729_v59 = vmul.f32 %v1595_v26, %v665_v50  ;;  %v681_v52 = vadd.f32 2.0, %v1599_v27  ;;  %v569_v55 = vmul.f32 1.442695, %v2287_v0 }
 0x139   :  { %v1032_v51 = vsub.f32 %v2195_v42, %v968_v21  ;;  %v841_v35 = vadd.f32 2.0, %v713_v45  ;;  %v824_v49 = vmul.f32 2.0, %v2223_v18  ;;  %v633_v63 = vmul.f32 1.442695, %v2296_v38 }
 0x13a   :  { %v1601_v40 = vpop.eup %1600  ;;  %v857_v56 = vadd.f32 2.0, %v729_v59  ;;  %v745_v53 = vmul.f32 %v1599_v27, %v681_v52  ;;  %v793_v60 = vmul.f32 2.0, %v2245_v34  ;;  %v809_v24 = vmul.f32 2.0, %v2248_v39 }
 0x13b   :  { %v1603_v12 = vpop.eup %1602  ;;  %1096 = vst [vmem:[%s2362_s3 + $0x68] sm:$0xff] %v1032_v51  ;;  %v984_v37 = vmul.f32 %v1601_v40, %v792_v30  ;;  %1610 = vrcp.f32 %v841_v35  ;;  %v825_v33 = vmul.f32 2.0, %v2268_v11  ;;  %v778_v29 = vmul.f32 2.0, %v2271_v36 }
 0x13c   :  { %v1605_v62 = vpop.eup %1604  ;;  %v1000_v42 = vmul.f32 %v1603_v12, %v808_v32  ;;  %1612 = vrcp.f32 %v857_v56  ;;  %v873_v47 = vadd.f32 2.0, %v745_v53  ;;  %v794_v35 = vmul.f32 2.0, %v2287_v0 }
 0x13d   :  { %v1607_v17 = vpop.eup %1606  ;;  %v1048_v1 = vsub.f32 %v2214_v41, %v984_v37  ;;  %v697_v44 = vadd.f32 2.0, %v1605_v62  ;;  %1614 = vpow2.f32 %v569_v55  ;;  %v777_v41 = vmul.f32 2.0, %v2242_v48 }
 0x13e   :  { %v1609_v46 = vpop.eup %1608  ;;  %v1064_v6 = vsub.f32 %v2217_v43, %v1000_v42  ;;  %v650_v54 = vadd.f32 2.0, %v1607_v17  ;;  %1616 = vpow2.f32 %v601_v57  ;;  %v810_v55 = vmul.f32 2.0, %v2293_v61 }
 0x13f   :  { %1112 = vst [vmem:[%s2362_s3 + $0xe8] sm:$0xff] %v1048_v1  ;;  %v1016_v8 = vmul.f32 %v1609_v46, %v824_v49  ;;  %1618 = vrcp.f32 %v873_v47  ;;  %v761_v2 = vmul.f32 %v1605_v62, %v697_v44 }
 0x140   :  { %1128 = vst [vmem:[%s2362_s3 + $0x168] sm:$0xff] %v1064_v6  ;;  %v714_v7 = vmul.f32 %v1607_v17, %v650_v54  ;;  %1620 = vpow2.f32 %v633_v63 }
 0x141   :  { %v1611_v14 = vpop.eup %1610  ;;  %v1080_v43 = vsub.f32 %v2223_v18, %v1016_v8  ;;  %v889_v3 = vadd.f32 2.0, %v761_v2 }
 0x142   :  { %v1613_v9 = vpop.eup %1612  ;;  %v969_v58 = vmul.f32 %v1611_v14, %v777_v41  ;;  %v842_v19 = vadd.f32 2.0, %v714_v7 }
 0x143   :  { %v1615_v10 = vpop.eup %1614  ;;  %1144 = vst [vmem:[%s2362_s3 + $0x1e8] sm:$0xff] %v1080_v43  ;;  %v985_v13 = vmul.f32 %v1613_v9, %v793_v60  ;;  %1622 = vrcp.f32 %v889_v3 }
 0x144   :  { %v1617_v22 = vpop.eup %1616  ;;  %v1033_v23 = vsub.f32 %v2242_v48, %v969_v58  ;;  %1624 = vrcp.f32 %v842_v19  ;;  %v666_v18 = vadd.f32 2.0, %v1615_v10 }
 0x145   :  { %v1619_v15 = vpop.eup %1618  ;;  %v1049_v25 = vsub.f32 %v2245_v34, %v985_v13  ;;  %v682_v4 = vadd.f32 2.0, %v1617_v22 }
 0x146   :  { %v1621_v26 = vpop.eup %1620  ;;  %1097 = vst [vmem:[%s2362_s3 + $0x70] sm:$0xff] %v1033_v23  ;;  %v1001_v16 = vmul.f32 %v1619_v15, %v809_v24  ;;  %v730_v30 = vmul.f32 %v1615_v10, %v666_v18 }
 0x147   :  { %1113 = vst [vmem:[%s2362_s3 + $0xf0] sm:$0xff] %v1049_v25  ;;  %v746_v48 = vmul.f32 %v1617_v22, %v682_v4  ;;  %v698_v5 = vadd.f32 2.0, %v1621_v26 }
 0x148   :  { %v1065_v31 = vsub.f32 %v2248_v39, %v1001_v16  ;;  %v858_v20 = vadd.f32 2.0, %v730_v30 }
 0x149   :  { %v1623_v34 = vpop.eup %1622  ;;  %v874_v28 = vadd.f32 2.0, %v746_v48  ;;  %v762_v50 = vmul.f32 %v1621_v26, %v698_v5 }
 0x14a   :  { %v1625_v21 = vpop.eup %1624  ;;  %1129 = vst [vmem:[%s2362_s3 + $0x170] sm:$0xff] %v1065_v31  ;;  %v1017_v45 = vmul.f32 %v1623_v34, %v825_v33  ;;  %1626 = vrcp.f32 %v858_v20 }
 0x14b   :  { %v970_v27 = vmul.f32 %v1625_v21, %v778_v29  ;;  %1628 = vrcp.f32 %v874_v28  ;;  %v890_v59 = vadd.f32 2.0, %v762_v50 }
 0x14c   :  { %v1081_v39 = vsub.f32 %v2268_v11, %v1017_v45  ;;  %v826_v11 = vmul.f32 2.0, %v2296_v38 }
 0x14d   :  { %v1034_v51 = vsub.f32 %v2271_v36, %v970_v27  ;;  %1630 = vrcp.f32 %v890_v59 }
 0x14e   :  { %1145 = vst [vmem:[%s2362_s3 + $0x1f0] sm:$0xff] %v1081_v39 }
 0x14f   :  { %1098 = vst [vmem:[%s2362_s3 + $0x78] sm:$0xff] %v1034_v51 }
 0x150   :  { %v1627_v52 = vpop.eup %1626 }
 0x151   :  { %v1629_v40 = vpop.eup %1628  ;;  %v986_v32 = vmul.f32 %v1627_v52, %v794_v35 }
 0x152   :  { %v1002_v56 = vmul.f32 %v1629_v40, %v810_v55 }
 0x153   :  { %v1631_v36 = vpop.eup %1630  ;;  %v1050_v57 = vsub.f32 %v2287_v0, %v986_v32 }
 0x154   :  { %v1066_v12 = vsub.f32 %v2293_v61, %v1002_v56  ;;  %v1018_v37 = vmul.f32 %v1631_v36, %v826_v11 }
 0x155   :  { %1114 = vst [vmem:[%s2362_s3 + $0xf8] sm:$0xff] %v1050_v57 }
 0x156   :  { %1130 = vst [vmem:[%s2362_s3 + $0x178] sm:$0xff] %v1066_v12  ;;  %v1082_v53 = vsub.f32 %v2296_v38, %v1018_v37 }
 0x158   :  { %1146 = vst [vmem:[%s2362_s3 + $0x1f8] sm:$0xff] %v1082_v53 }

</bundles_post_ra>
